<compile_context>
chip_gen: v7x
topology: tpu7x:2x2x1
jax: 0.10.0
libtpu: 0.0.40
codegen_flags: <defaults>
</compile_context>

<pallas_src>
import math
import jax
import jax.numpy as jnp
from jax.experimental import pallas as pl
from jax.experimental.pallas import tpu as pltpu


def _pick_pixel_tile(hw, n_batch, tl_max=2048):
    """Largest multiple-of-128 divisor of hw that is <= tl_max.

    Guarantees no input/output padding (the tile divides H*W exactly) and, when
    n_batch == 1, at least 2 grid steps so both v7x TensorCores get work.
    """
    if hw % 128 != 0:
        # Full-extent pixel block: always a legal BlockSpec, still no padding.
        return hw
    cap = min(tl_max, hw)
    if n_batch == 1 and hw >= 256:
        cap = min(cap, hw // 2)          # >= 2 parallel grid units for v7x's 2 TCs
    cap = max(128, (cap // 128) * 128)
    tl = cap
    while hw % tl != 0:
        tl -= 128
    return tl


def _conv1x1_kernel(w_ref, b_ref, x_ref, o_ref):
    # w: (Cproj, Cin)   b: (Cproj, 1)   x: (Cin, TL)   o: (Cproj, TL)
    y = jnp.dot(w_ref[...], x_ref[...], preferred_element_type=jnp.float32)
    o_ref[...] = (y + b_ref[...]).astype(o_ref.dtype)   # bias: per-channel, lane-broadcast


def patch_unembed_pallas(x_nchw, w, b, *, patch_size=4, out_chans=3, tl_max=2048):
    """PatchUnEmbed forward.

    x_nchw: (N, embed_dim, H, W)
    w:      (Cproj, embed_dim) == PyTorch conv weight[:, :, 0, 0], Cproj = out_chans*patch_size**2
    b:      (Cproj,)
    Returns (N, out_chans, H*patch_size, W*patch_size).
    """
    N, Cin, H, W = x_nchw.shape
    Cproj = w.shape[0]
    assert Cproj == out_chans * patch_size ** 2
    assert w.shape == (Cproj, Cin) and b.shape == (Cproj,)
    HW = H * W

    tl = _pick_pixel_tile(HW, N, tl_max)

    # NCHW -> (N, Cin, H*W) is a free view (no transpose, no pad).
    x_flat = x_nchw.reshape(N, Cin, HW)
    b2 = b.reshape(Cproj, 1)

    grid = (N, HW // tl)
    conv = pl.pallas_call(
        _conv1x1_kernel,
        out_shape=jax.ShapeDtypeStruct((N, Cproj, HW), x_nchw.dtype),
        grid_spec=pltpu.PrefetchScalarGridSpec(
            num_scalar_prefetch=0,
            grid=grid,
            in_specs=[
                pl.BlockSpec((Cproj, Cin), lambda n, t: (0, 0)),      # weight, VMEM-resident
                pl.BlockSpec((Cproj, 1), lambda n, t: (0, 0)),        # bias, VMEM-resident
                pl.BlockSpec((None, Cin, tl), lambda n, t: (n, 0, t)),  # pixel tile (lane-dense)
            ],
            out_specs=pl.BlockSpec((None, Cproj, tl), lambda n, t: (n, 0, t)),
        ),
        compiler_params=pltpu.CompilerParams(
            dimension_semantics=("parallel", "parallel"),
            vmem_limit_bytes=32 * 1024 * 1024,   # > v5e's 16 MiB scoped default, == v7x default
        ),
    )(w, b2, x_flat)

    # PixelShuffle(patch_size): out[n,c,h*p+i,w*p+j] = conv[n, c*p^2 + i*p + j, h, w].
    # Channel axis is split for free; XLA sees exactly one transpose and no pad/slice.
    y = conv.reshape(N, out_chans, patch_size, patch_size, H, W)
    y = jnp.transpose(y, (0, 1, 4, 2, 5, 3))     # (N, C, H, p, W, p)
    return y.reshape(N, out_chans, H * patch_size, W * patch_size)


if __name__ == "__main__":
    key = jax.random.PRNGKey(0)
    k_x, k_w, k_b = jax.random.split(key, 3)

    # Small shapes consistent with the module defaults.
    N, H, Wd = 2, 16, 16
    patch_size, out_chans, embed_dim = 4, 3, 96
    Cproj = out_chans * patch_size ** 2            # 48

    x = jax.random.normal(k_x, (N, embed_dim, H, Wd), jnp.float32)
    # PyTorch Conv2d default init: U(-1/sqrt(fan_in), 1/sqrt(fan_in)); 1x1 kernel -> fan_in = Cin
    bound = 1.0 / math.sqrt(embed_dim)
    w = jax.random.uniform(k_w, (Cproj, embed_dim), jnp.float32, -bound, bound)
    b = jax.random.uniform(k_b, (Cproj,), jnp.float32, -bound, bound)

    y = patch_unembed_pallas(x, w, b, patch_size=patch_size, out_chans=out_chans)
    jax.block_until_ready(y)

    # Pure-JAX reference: 1x1 conv (channel matmul) + PixelShuffle.
    conv_ref = jnp.einsum("oc,nchw->nohw", w, x,
                          precision=jax.lax.Precision.HIGHEST) + b[None, :, None, None]
    ref = conv_ref.reshape(N, out_chans, patch_size, patch_size, H, Wd)
    ref = jnp.transpose(ref, (0, 1, 4, 2, 5, 3)).reshape(
        N, out_chans, H * patch_size, Wd * patch_size)

    assert y.shape == (N, out_chans, H * patch_size, Wd * patch_size)
    max_err = float(jnp.max(jnp.abs(y - ref)))
    assert jnp.allclose(y, ref, atol=1e-4, rtol=1e-4), max_err

    print("KERNEL_OK")
</pallas_src>

<mosaic_0001>
module attributes {stable_mosaic.version = 11 : i64} {
  func.func @_conv1x1_kernel(%arg0: i32, %arg1: i32, %arg2: memref<48x96xf32, #tpu.memory_space<vmem>>, %arg3: memref<48x1xf32, #tpu.memory_space<vmem>>, %arg4: memref<1x96x256xf32, #tpu.memory_space<vmem>>, %arg5: memref<1x48x256xf32, #tpu.memory_space<vmem>>) attributes {dimension_semantics = [#tpu.dimension_semantics<parallel>, #tpu.dimension_semantics<parallel>], iteration_bounds = array<i64: 2, 1>, scalar_prefetch = 0 : i64, scratch_operands = 0 : i64, tpu.core_type = #tpu.core_type<tc>, window_params = [{pipeline_mode = #tpu.pipeline_mode<synchronous>, transform_indices = @transform_0, window_bounds = array<i64: 48, 96>}, {pipeline_mode = #tpu.pipeline_mode<synchronous>, transform_indices = @transform_1, window_bounds = array<i64: 48, 1>}, {transform_indices = @transform_2, window_bounds = array<i64: 1, 96, 256>}, {transform_indices = @transform_3, window_bounds = array<i64: 1, 48, 256>}]} {
    %c0 = arith.constant 0 : index
    %c0_0 = arith.constant 0 : index
    %0 = vector.load %arg2[%c0, %c0_0] : memref<48x96xf32, #tpu.memory_space<vmem>>, vector<48x96xf32>
    %c0_1 = arith.constant 0 : index
    %c0_2 = arith.constant 0 : index
    %c0_3 = arith.constant 0 : index
    %1 = vector.load %arg4[%c0_1, %c0_2, %c0_3] : memref<1x96x256xf32, #tpu.memory_space<vmem>>, vector<1x96x256xf32>
    %2 = vector.shape_cast %1 : vector<1x96x256xf32> to vector<96x256xf32>
    %cst = arith.constant dense<0.000000e+00> : vector<48x256xf32>
    %3 = tpu.matmul %0, %2, %cst {dimension_numbers = #tpu.dot_dimension_numbers<[1], [0], [0], [1], [0, 0, 1, 1], [], []>} : vector<48x96xf32>, vector<96x256xf32>, vector<48x256xf32> -> vector<48x256xf32>
    %c0_4 = arith.constant 0 : index
    %c0_5 = arith.constant 0 : index
    %4 = vector.load %arg3[%c0_4, %c0_5] : memref<48x1xf32, #tpu.memory_space<vmem>>, vector<48x1xf32>
    %5 = vector.broadcast %4 : vector<48x1xf32> to vector<48x256xf32>
    %6 = arith.addf %3, %5 : vector<48x256xf32>
    %c0_6 = arith.constant 0 : index
    %c0_7 = arith.constant 0 : index
    %c0_8 = arith.constant 0 : index
    %7 = vector.load %arg5[%c0_6, %c0_7, %c0_8] : memref<1x48x256xf32, #tpu.memory_space<vmem>>, vector<1x48x256xf32>
    %8 = vector.shape_cast %7 : vector<1x48x256xf32> to vector<48x256xf32>
    %9 = vector.shape_cast %6 : vector<48x256xf32> to vector<1x48x256xf32>
    tpu.vector_store %arg5[%c0_6, %c0_7, %c0_8], %9 {strides = array<i32>} : memref<1x48x256xf32, #tpu.memory_space<vmem>>, vector<1x48x256xf32>,
    return
  }
  func.func @transform_0(%arg0: i32, %arg1: i32) -> (i32, i32) {
    %c0_i32 = arith.constant 0 : i32
    %c0_i32_0 = arith.constant 0 : i32
    %c0_i32_1 = arith.constant 0 : i32
    return %c0_i32, %c0_i32_0 : i32, i32
  }
  func.func @transform_1(%arg0: i32, %arg1: i32) -> (i32, i32) {
    %c0_i32 = arith.constant 0 : i32
    %c0_i32_0 = arith.constant 0 : i32
    %c0_i32_1 = arith.constant 0 : i32
    return %c0_i32, %c0_i32_0 : i32, i32
  }
  func.func @transform_2(%arg0: i32, %arg1: i32) -> (i32, i32, i32) {
    %c0_i32 = arith.constant 0 : i32
    %c0_i32_0 = arith.constant 0 : i32
    return %arg0, %c0_i32, %arg1 : i32, i32, i32
  }
  func.func @transform_3(%arg0: i32, %arg1: i32) -> (i32, i32, i32) {
    %c0_i32 = arith.constant 0 : i32
    %c0_i32_0 = arith.constant 0 : i32
    return %arg0, %c0_i32, %arg1 : i32, i32, i32
  }
}

</mosaic_0001>

<bundles_post_ra>
// kernel: tpu_custom_call.1
= control target key start
LH: loop header
LB: loop body
LE: loop exit
PB: predicated region body
PF: predicated region fallthrough
CT: control target
= control target key end

     0   :  { %8 = vsyncpa [#allocation3], 0  ;;  %s1037_s0 = inlined_call_operand.vmem [shape: f32[48,96], index: 0, kind: input, shape index: {}]   ;;  %s1038_s1 = inlined_call_operand.vmem [shape: f32[48,1], index: 1, kind: input, shape index: {}]   ;;  %s1039_s2 = inlined_call_operand.hbm [shape: f32[2,96,256], index: 2, kind: input, shape index: {}]   ;;  %s1040_s3 = inlined_call_operand.hbm [shape: f32[2,48,256], index: 3, kind: output, shape index: {}]  }
   0x1   :  { %10 = vsyncpa [#allocation3 + $0x1], 0 }
   0x2   :  { %11 = vsyncpa [#allocation4], 0 }
   0x3   :  { %13 = vsyncpa [#allocation4 + $0x1], 0  ;;  %s778_s12 = smov 0   ;;  %s780_s13 = smov 0  }
   0x4   :  { %s782_s14 = smov 0   ;;  %s784_s15 = smov 0  }
   0x5   :  { %s786_s16 = smov 0   ;;  %s788_s17 = smov 0  }
   0x6 LB: > { %s510_s18 = sadd.s32 4294967295, %s748_s17   ;;  %s511_s19 = sadd.s32 4294967294, %s748_s17   ;;  %s748_s17 = sphi %s788_s17, %s19_s17   ;;  %s744_s16 = sphi %s786_s16, %s1055_s16   ;;  %s740_s15 = sphi %s784_s15, %s1054_s15   ;;  %s736_s14 = sphi %s782_s14, %s1053_s14   ;;  %s732_s13 = sphi %s780_s13, %s1052_s13   ;;  %s728_s12 = sphi %s778_s12, %s1051_s12  }
   0x7   : > { %s31_s20 = sadd.s32 1, %s744_s16  ;;  %s82_s21 = sadd.s32 1, %s736_s14 }
   0x8   : > { %p33_p0 = scmp.ge.s32.totalorder %s31_s20, 2  ;;  %p89_p1 = scmp.ne.s32.totalorder %s736_s14, %s732_s13 }
   0x9   : > { %p90_p2 = scmp.eq.s32.totalorder %s748_s17, 0  ;;  %p95_p3 = scmp.ne.s32.totalorder %s732_s13, %s728_s12 }
   0xa   : > { %s1057_s20 = smov (%p33_p0, %s31_s20), 0  ;;  %p96_p5 = scmp.eq.s32.totalorder %s510_s18, 0 }
   0xb   : > { %p819_p4 = por %p90_p2, %p89_p1  ;;  %s77_s23 = ssub.s32 %s744_s16, %s1057_s20 }
   0xc   : > { %p121_p6 = scmp.eq.s32.totalorder %s510_s18, 1  ;;  %p80_p7 = scmp.eq.s32.totalorder %s77_s23, 0 }
   0xd   : > { %p825_p8 = por %p96_p5, %p95_p3  ;;  %p127_p10 = scmp.eq.s32.totalorder %s511_s19, 1 }
   0xe   : > { %p829_p9 = por %p121_p6, %p89_p1  ;;  %p578_p13 = scmp.lt.s32.totalorder %s748_s17, 2 }
   0xf   : > { %s834_s26 = scalar_select %p80_p7, %s736_s14, %s82_s21  }
  0x10   : > { %s1044_s25 = scalar_select %p829_p9, 1, 0 }
  0x11   : > { %p836_p11 = por %p127_p10, %p95_p3  ;;  %s153_s28 = sand.u32 1, %s736_s14  }
  0x12   : > { %s561_s29 = smul.u32 192, %s153_s28  ;;  %p846_p0 = pnand %p578_p13, %p819_p4 }
  0x13   : > { %s1045_s27 = scalar_select %p836_p11, 1, 0 }
  0x14   : > { %s562_s30 = smul.u32 3072, %s744_s16  ;;  %s157_s8 = scalar_lea.vmem [#allocation2], %s561_s29 }
  0x15   : > { %s166_s9 = sshll.u32 %s157_s8, 4  ;;  %s858_s10 = scalar_lea.sflag [#allocation3], %s153_s28  ;;  %s855_s9 = int_to_ptr.vmem [resolvable:$true] %s166_s9 }
  0x16   : > { %s853_s7 = scalar_lea.hbm %s1039_s2, %s562_s30  ;;  %p638_p3 = pneg %p846_p0 }
  0x17   : > { %s636_s11 = scalar_lea.hbm %s853_s7, 3072  ;;  %s641_s21 = scalar_lea.hbm %s1039_s2, 6144 }
  0x18   : > { %p637_p2 = scmp.ne.s32.totalorder %s853_s7, %s636_s11  ;;  %p642_p6 = scmp.lt.u32.totalorder %s853_s7, %s1039_s2 }
  0x19   : > { %p643_p7 = scmp.lt.u32.totalorder %s641_s21, %s636_s11  ;;  %p645_p13 = scmp.lt.u32.totalorder %s636_s11, %s853_s7 }
  0x1a   : > { %p639_p4 = pnand %p638_p3, %p637_p2 }
  0x1b   : > { %p644_p10 = por %p643_p7, %p642_p6 }
  0x1c   : > { %p640_p5 = pneg %p639_p4 }
  0x1d   : > { %p646_p12 = por %p645_p13, %p644_p10 }
  0x1f   : > { %p647_p1 = pnand %p646_p12, %p640_p5 }
  0x21   : > { %650 = shalt.err (!%p647_p1)
}
  0x22   : > { %s651_s28 = scalar_lea.vmem %s855_s9, 3072  ;;  %s750_s29 = smov [#allocation2]  }
  0x23   : > { %p652_p2 = scmp.ne.s32.totalorder %s855_s9, %s651_s28  ;;  %s656_s30 = sshll.u32 %s750_s29, 4  ;;  %s657_s30 = int_to_ptr.vmem [resolvable:$false] %s656_s30 }
  0x24   : > { %s658_s5 = scalar_lea.vmem %s657_s30, 6144  ;;  %p659_p9 = scmp.lt.s32.totalorder %s855_s9, %s657_s30 }
  0x25   : > { %p654_p4 = pnand %p652_p2, %p638_p3  ;;  %p660_p6 = scmp.lt.s32.totalorder %s658_s5, %s651_s28 }
  0x27   : > { %p655_p11 = pneg %p654_p4  ;;  %p661_p7 = por %p660_p6, %p659_p9 }
  0x29   : > { %p662_p10 = pnand %p661_p7, %p655_p11 }
  0x2b   : > { %665 = shalt.err (!%p662_p10)
}
  0x2c   : > { %s751_s6 = smov 256   ;;  %s752_s8 = smov 16  }
  0x2d   : > { %573 = dma.hbm_to_vmem [thread:$0]  (!%p846_p0), %s853_s7, 3072, %s855_s9, %s858_s10, %s751_s6, %s751_s6, %s752_s8  }
  0x2e   : > { %p174_p12 = scmp.lt.s32.totalorder %s748_s17, 3  ;;  %p1047_p1 = scmp.ge.s32.totalorder %s748_s17, 1 }
  0x30   : > { %p175_p3 = pnand %p1047_p1, %p174_p12 }
  0x31   : > { %s890_s11 = sand.u32 (!%p175_p3), 1, %s732_s13  }
  0x32   : > { %178 = sbr.rel (%p175_p3) target bundleno = 323 (0x143), region = 32  ;;  %s181_s19 = scalar_lea.sflag (!%p175_p3), [#allocation3], %s890_s11 }
  0x33   : > { %s563_s18 = smul.u32 (!%p175_p3), 192, %s890_s11 }
  0x35   : > { %s894_s21 = scalar_lea.vmem (!%p175_p3), [#allocation2], %s563_s18 }
  0x39   : > { %719 = dma.done.wait (%p825_p8), %s181_s19, 3072  }
  0x3a   : > { %721 = vsyncadd (%p825_p8), %s181_s19, 4294964224  ;;  %v753_v0 = vmov 0.0   ;;  %v754_v1 = vmov 0   ;;  %v216_v2 = vld [vmem:[%s894_s21 + $0x8] sm:$0xff]  ;;  %v218_v3 = vld [vmem:[%s894_s21 + $0x18] sm:$0xff]  ;;  %vm275_vm0 = vcmask 785408  }
  0x3b   : > { %358 = vmatprep.mubr.f32.mxu0 %v753_v0  ;;  %376 = vmatprep.mubr.f32.mxu1 %v753_v0  ;;  %v215_v4 = vld [vmem:[%s894_s21] sm:$0xff]  ;;  %v525_v5 = vpack.c.bf16 %v218_v3, %v216_v2  ;;  %v217_v6 = vld [vmem:[%s894_s21 + $0x10] sm:$0xff]  ;;  %v220_v7 = vld [vmem:[%s894_s21 + $0x28] sm:$0xff]  ;;  %s564_s29 = smul.u32 96, %s890_s11  ;;  %s408_s19 = scalar_lea.sflag [#allocation4], %s890_s11 }
  0x3c   : > { %635 = vset.pattern.permute.xlu1 %v754_v1  ;;  %634 = vset.pattern.permute.xlu0 %v754_v1  ;;  %v222_v8 = vld [vmem:[%s894_s21 + $0x38] sm:$0xff]  ;;  %v527_v9 = vpack.c.bf16 %v217_v6, %v215_v4  ;;  %v219_v11 = vld [vmem:[%s894_s21 + $0x20] sm:$0xff]  ;;  %v221_v12 = vld [vmem:[%s894_s21 + $0x30] sm:$0xff]  ;;  %s565_s5 = smul.u32 1536, %s740_s15  ;;  %p1048_p9 = scmp.ne.s32.totalorder %s1044_s25, 0 }
  0x3d   : > { %v529_v10 = vpack.c.bf16 %v222_v8, %v220_v7  ;;  %v224_v13 = vld [vmem:[%s894_s21 + $0x48] sm:$0xff]  ;;  %526 = vmatprep.subr.bf16.mxu0 %v525_v5  ;;  %549 = vmatprep.subr.bf16.mxu1 %v525_v5  ;;  %v226_v14 = vld [vmem:[%s894_s21 + $0x58] sm:$0xff]  ;;  %v531_v15 = vpack.c.bf16 %v221_v12, %v219_v11  ;;  %v223_v17 = vld [vmem:[%s894_s21 + $0x40] sm:$0xff]  ;;  %s967_s30 = scalar_lea.vmem [#allocation5], %s564_s29 }
  0x3e   : > { %528 = vmatpush1.bf16.msra.mxu0 %v527_v9  ;;  %555 = vmatpush1.bf16.msra.mxu1 %v527_v9  ;;  %v533_v16 = vpack.c.bf16 %v226_v14, %v224_v13  ;;  %v225_v18 = vld [vmem:[%s894_s21 + $0x50] sm:$0xff]  ;;  %v228_v19 = vld [vmem:[%s894_s21 + $0x68] sm:$0xff]  ;;  %v230_v20 = vld [vmem:[%s894_s21 + $0x78] sm:$0xff]  ;;  %s423_s6 = sshll.u32 %s967_s30, 4  ;;  %s982_s18 = scalar_lea.hbm %s1040_s3, %s565_s5  ;;  %s984_s6 = int_to_ptr.vmem [resolvable:$true] %s423_s6 }
  0x3f   : > { %530 = vmatprep.subr.bf16.mxu0 %v529_v10  ;;  %550 = vmatprep.subr.bf16.mxu1 %v529_v10  ;;  %v535_v21 = vpack.c.bf16 %v225_v18, %v223_v17  ;;  %v537_v22 = vpack.c.bf16 %v230_v20, %v228_v19  ;;  %v227_v23 = vld [vmem:[%s894_s21 + $0x60] sm:$0xff]  ;;  %v229_v24 = vld [vmem:[%s894_s21 + $0x70] sm:$0xff]  ;;  %v232_v25 = vld [vmem:[%s894_s21 + $0x88] sm:$0xff]  ;;  %s666_s24 = scalar_lea.vmem %s984_s6, 1536 }
  0x40   : > { %v234_v26 = vld [vmem:[%s894_s21 + $0x98] sm:$0xff]  ;;  %v241_v27 = vld [vmem:[%s1038_s1 + $0x10] sm:$0xff]  ;;  %v239_v28 = vld [vmem:[%s1038_s1] sm:$0xff]  ;;  %v539_v29 = vpack.c.bf16 %v229_v24, %v227_v23  ;;  %p667_p8 = scmp.ne.s32.totalorder %s984_s6, %s666_s24 }
  0x41   : > { %257 = vperm.xlu1 %635, %v241_v27   ;;  %247 = vperm.xlu0 %634, %v239_v28   ;;  %v242_v30 = vld [vmem:[%s1038_s1 + $0x18] sm:$0xff]  ;;  %v240_v31 = vld [vmem:[%s1038_s1 + $0x8] sm:$0xff]  ;;  %v541_v32 = vpack.c.bf16 %v234_v26, %v232_v25  ;;  %v231_v33 = vld [vmem:[%s894_s21 + $0x80] sm:$0xff] }
  0x42   : > { %532 = vmatpush1.bf16.msra.mxu0 %v531_v15  ;;  %556 = vmatpush1.bf16.msra.mxu1 %v531_v15  ;;  %v233_v34 = vld [vmem:[%s894_s21 + $0x90] sm:$0xff]  ;;  %v236_v35 = vld [vmem:[%s894_s21 + $0xa8] sm:$0xff]  ;;  %v238_v36 = vld [vmem:[%s894_s21 + $0xb8] sm:$0xff]  ;;  %p668_p11 = pnand %p667_p8, %p1048_p9 }
  0x43   : > { %534 = vmatprep.subr.bf16.mxu0 %v533_v16  ;;  %551 = vmatprep.subr.bf16.mxu1 %v533_v16  ;;  %v543_v37 = vpack.c.bf16 %v233_v34, %v231_v33  ;;  %v244_v38 = vld [vmem:[%s1038_s1 + $0x28] sm:$0xff]  ;;  %v243_v39 = vld [vmem:[%s1038_s1 + $0x20] sm:$0xff]  ;;  %v545_v40 = vpack.c.bf16 %v238_v36, %v236_v35  ;;  %v237_v42 = vld [vmem:[%s894_s21 + $0xb0] sm:$0xff] }
  0x44   : > { %v235_v41 = vld [vmem:[%s894_s21 + $0xa0] sm:$0xff]  ;;  %v212_v45 = vld [vmem:[%s1037_s0 + $0x18] sm:$0xff]  ;;  %v210_v46 = vld [vmem:[%s1037_s0 + $0x8] sm:$0xff]  ;;  %p669_p0 = pneg %p668_p11  ;;  %s755_s21 = smov [#allocation5]  }
  0x45   : > { %262 = vperm.xlu1 %635, %v242_v30   ;;  %252 = vperm.xlu0 %634, %v240_v31   ;;  %v547_v43 = vpack.c.bf16 %v237_v42, %v235_v41  ;;  %v209_v44 = vld [vmem:[%s1037_s0] sm:$0xff]  ;;  %v211_v48 = vld [vmem:[%s1037_s0 + $0x10] sm:$0xff]  ;;  %v214_v49 = vld [vmem:[%s1037_s0 + $0x28] sm:$0xff]  ;;  %s670_s4 = sshll.u32 %s755_s21, 4  ;;  %s671_s4 = int_to_ptr.vmem [resolvable:$false] %s670_s4 }
  0x46   : > { %536 = vmatpush1.bf16.msra.mxu0 %v535_v21  ;;  %557 = vmatpush1.bf16.msra.mxu1 %v535_v21  ;;  %v213_v47 = vld [vmem:[%s1037_s0 + $0x20] sm:$0xff]  ;;  %s672_s7 = scalar_lea.vmem %s671_s4, 3072  ;;  %p673_p5 = scmp.lt.s32.totalorder %s984_s6, %s671_s4 }
  0x47   : > { %538 = vmatprep.subr.bf16.mxu0 %v537_v22  ;;  %552 = vmatprep.subr.bf16.mxu1 %v537_v22  ;;  %p674_p13 = scmp.lt.s32.totalorder %s672_s7, %s666_s24 }
  0x49   : > { %272 = vperm.xlu1 %635, %v244_v38   ;;  %267 = vperm.xlu0 %634, %v243_v39   ;;  %p675_p2 = por %p674_p13, %p673_p5 }
  0x4a   : > { %540 = vmatpush1.bf16.msra.mxu0 %v539_v29  ;;  %558 = vmatpush1.bf16.msra.mxu1 %v539_v29 }
  0x4b   : > { %542 = vmatprep.subr.bf16.mxu0 %v541_v32  ;;  %553 = vmatprep.subr.bf16.mxu1 %v541_v32  ;;  %p676_p4 = pnand %p675_p2, %p669_p0 }
  0x4e   : > { %544 = vmatpush1.bf16.msra.mxu0 %v543_v37  ;;  %559 = vmatpush1.bf16.msra.mxu1 %v543_v37 }
  0x4f   : > { %546 = vmatprep.subr.bf16.mxu0 %v545_v40  ;;  %554 = vmatprep.subr.bf16.mxu1 %v545_v40 }
  0x52   : > { %548 = vmatpush1.bf16.msra.mxu0 %v547_v43  ;;  %560 = vmatpush1.bf16.msra.mxu1 %v547_v43 }
  0x55   : > { %516 = vmatmul.mubr.msk.f32.vlgmr.msra.gmra.mrb[0].mxu0 %vm275_vm0, %v209_v44  ;;  %519 = vmatmul.mubr.msk.f32.vlgmr.msra.gmra.mrb[0].mxu1 %vm275_vm0, %v212_v45 }
  0x56   : > { %364 = vmatprep.mubr.f32.mxu0 %v753_v0  ;;  %382 = vmatprep.mubr.f32.mxu1 %v753_v0 }
  0x59   : > { %517 = vmatmul.mubr.msk.f32.gmra.mrb[2].mxu0 %vm275_vm0, %v210_v46  ;;  %520 = vmatmul.mubr.msk.f32.gmra.mrb[2].mxu1 %vm275_vm0, %v213_v47 }
  0x5a   : > { %370 = vmatprep.mubr.f32.mxu0 %v753_v0  ;;  %388 = vmatprep.mubr.f32.mxu1 %v753_v0 }
  0x5d   : > { %518 = vmatmul.mubr.msk.f32.gmra.mrb[4].mxu0 %vm275_vm0, %v211_v48  ;;  %521 = vmatmul.mubr.msk.f32.gmra.mrb[4].mxu1 %vm275_vm0, %v214_v49 }
  0xc0   : > { %v248_v50 = vpop.permute.xlu0 %247  ;;  %v258_v51 = vpop.permute.xlu1 %257 }
  0xc4   : > { %v253_v52 = vpop.permute.xlu0 %252  ;;  %v263_v53 = vpop.permute.xlu1 %262 }
  0xc8   : > { %v268_v62 = vpop.permute.xlu0 %267  ;;  %v273_v7 = vpop.permute.xlu1 %272 }
 0x128   : > { %v360_v54 = vpop.f32.mrb[0].mxu0  ;;  %v378_v55 = vpop.f32.mrb[0].mxu1 }
 0x129   : > { %v361_v56 = vadd.f32 %v360_v54, %v248_v50  ;;  %v379_v57 = vadd.f32 %v378_v55, %v263_v53  ;;  %v362_v58 = vpop.f32.mrb[1].mxu0  ;;  %v380_v59 = vpop.f32.mrb[1].mxu1 }
 0x12a   : > { %v363_v60 = vadd.f32 %v362_v58, %v248_v50  ;;  %v381_v61 = vadd.f32 %v380_v59, %v263_v53 }
 0x12b   : > { %395 = vst [vmem:[%s967_s30] sm:$0xff] %v361_v56  ;;  %401 = vst [vmem:[%s967_s30 + $0x30] sm:$0xff] %v379_v57 }
 0x12c   : > { %396 = vst [vmem:[%s967_s30 + $0x8] sm:$0xff] %v363_v60  ;;  %402 = vst [vmem:[%s967_s30 + $0x38] sm:$0xff] %v381_v61  ;;  %v366_v63 = vpop.f32.mrb[2].mxu0  ;;  %v384_v0 = vpop.f32.mrb[2].mxu1 }
 0x12d   : > { %v367_v1 = vadd.f32 %v366_v63, %v253_v52  ;;  %v385_v2 = vadd.f32 %v384_v0, %v268_v62  ;;  %v368_v3 = vpop.f32.mrb[3].mxu0  ;;  %v386_v4 = vpop.f32.mrb[3].mxu1 }
 0x12e   : > { %v369_v5 = vadd.f32 %v368_v3, %v253_v52  ;;  %v387_v6 = vadd.f32 %v386_v4, %v268_v62 }
 0x12f   : > { %397 = vst [vmem:[%s967_s30 + $0x10] sm:$0xff] %v367_v1  ;;  %403 = vst [vmem:[%s967_s30 + $0x40] sm:$0xff] %v385_v2 }
 0x130   : > { %398 = vst [vmem:[%s967_s30 + $0x18] sm:$0xff] %v369_v5  ;;  %404 = vst [vmem:[%s967_s30 + $0x48] sm:$0xff] %v387_v6  ;;  %v372_v8 = vpop.f32.mrb[4].mxu0  ;;  %v390_v9 = vpop.f32.mrb[4].mxu1 }
 0x131   : > { %v373_v10 = vadd.f32 %v372_v8, %v258_v51  ;;  %v391_v11 = vadd.f32 %v390_v9, %v273_v7  ;;  %v374_v12 = vpop.f32.mrb[5].mxu0  ;;  %v392_v13 = vpop.f32.mrb[5].mxu1 }
 0x132   : > { %v375_v14 = vadd.f32 %v374_v12, %v258_v51  ;;  %v393_v15 = vadd.f32 %v392_v13, %v273_v7 }
 0x133   : > { %399 = vst [vmem:[%s967_s30 + $0x20] sm:$0xff] %v373_v10  ;;  %405 = vst [vmem:[%s967_s30 + $0x50] sm:$0xff] %v391_v11 }
 0x134   : > { %400 = vst [vmem:[%s967_s30 + $0x28] sm:$0xff] %v375_v14  ;;  %406 = vst [vmem:[%s967_s30 + $0x58] sm:$0xff] %v393_v15 }
 0x135   : > { %679 = shalt.err (!%p676_p4)
}
 0x136   : > { %s680_s9 = scalar_lea.hbm %s982_s18, 1536  ;;  %s684_s23 = scalar_lea.hbm %s1040_s3, 3072 }
 0x137   : > { %p681_p6 = scmp.ne.s32.totalorder %s982_s18, %s680_s9  ;;  %p685_p12 = scmp.lt.u32.totalorder %s982_s18, %s1040_s3 }
 0x138   : > { %p686_p1 = scmp.lt.u32.totalorder %s684_s23, %s680_s9  ;;  %p688_p8 = scmp.lt.u32.totalorder %s680_s9, %s982_s18 }
 0x139   : > { %p682_p7 = pnand %p681_p6, %p1048_p9 }
 0x13a   : > { %p687_p3 = por %p686_p1, %p685_p12 }
 0x13b   : > { %p683_p10 = pneg %p682_p7 }
 0x13c   : > { %p689_p11 = por %p688_p8, %p687_p3 }
 0x13e   : > { %p690_p0 = pnand %p689_p11, %p683_p10 }
 0x140   : > { %693 = shalt.err (!%p690_p0)
}
 0x141   : > { %s756_s30 = smov 256   ;;  %s757_s5 = smov 16  }
 0x142   : > { %568 = dma.vmem_to_hbm [thread:$0]  (%p1048_p9), %s984_s6, 1536, %s982_s18, %s408_s19, %s756_s30, %s756_s30, %s757_s5  }
 0x143 PF: > { %s438_s15 = sand.u32 1, %s728_s12   ;;  %p1049_p5 = scmp.ne.s32.totalorder %s1045_s27, 0 }
 0x144   : > { %p1050_p13 = scmp.ge.s32.totalorder %s748_s17, 2  ;;  %s439_s8 = scalar_lea.sflag [#allocation4], %s438_s15 }
 0x146   : > { %p575_p2 = pnand %p1050_p13, %p1049_p5 }
 0x148   : > { %723 = dma.done.wait (!%p575_p2), %s439_s8, 1536  }
 0x149   : > { %725 = vsyncadd (!%p575_p2), %s439_s8, 4294965760  ;;  %s19_s17 = sadd.s32 1, %s748_s17   ;;  %s1051_s12 = smov %s732_s13 }
 0x14a   : > { %p16_p4 = scmp.ge.s32.totalorder %s19_s17, 4   ;;  %s1052_s13 = smov %s736_s14 }
 0x14b   : > { %s1053_s14 = smov %s834_s26  ;;  %s1054_s15 = smov %s744_s16 }
 0x14c   : > { %s1055_s16 = smov %s1057_s20  ;;  %18 = sbr.rel (!%p16_p4) target bundleno = 6 (0x6), region = 77 }
 0x153   :  { %444 = vsyncpa [#allocation3], 1 }
 0x154   :  { %446 = vsyncpa [#allocation3 + $0x1], 1 }
 0x155   :  { %447 = vsyncpa [#allocation4], 1 }
 0x156   :  { %449 = vsyncpa [#allocation4 + $0x1], 1 }

</bundles_post_ra>
